<compile_context>
chip_gen: v7x
topology: tpu7x:2x2x1
jax: 0.10.0
libtpu: 0.0.40
codegen_flags: <defaults>
</compile_context>

<pallas_src>
import jax
import jax.numpy as jnp
import numpy as np
from jax.experimental import pallas as pl
from jax.experimental.pallas import tpu as pltpu

# ---------------- ModelArgs (synthetic) ----------------
EMB_DIMS = 32             # embeddings_dims
HID_DIMS = 2 * EMB_DIMS   # SwiGLU hidden dims = 64
BLOCK_SIZE = 8            # sequence length
NUM_EXPERTS = 4           # model_args.experts
TOP_K = 2                 # model_args.top_experts
BATCH = 2

GATE_PAD = 64                                      # gate logits + zero pad (lane aligned)
FUSED = GATE_PAD + (NUM_EXPERTS + 1) * HID_DIMS    # 64 + 5*64 = 384 = 3 * 128 lanes


# ---------------- Pallas kernel ----------------
def _moe_kernel(x_ref, w1c_ref, w2c_ref, w3c_ref, sel_ref, out_ref):
    xb = x_ref[...]                                                   # (TM, D) bf16

    # ---- fused up-projections (2 bf16 MXU matmuls, f32 accumulate) ----
    # up1 cols: [gate | pad | shared h1 | expert h1's]
    # up2 cols: [  0  |  0  | shared h2 | expert h2's]
    up1 = jnp.dot(xb, w1c_ref[...], preferred_element_type=jnp.float32)   # (TM, FUSED)
    up2 = jnp.dot(xb, w2c_ref[...], preferred_element_type=jnp.float32)   # (TM, FUSED)

    # ---- routing (f32): top-k with lowest-index tie-break (== torch.topk) ----
    gate = up1[:, :NUM_EXPERTS]                                       # (TM, E)
    col_f = jax.lax.broadcasted_iota(jnp.int32, gate.shape, 1).astype(jnp.float32)

    def pick_one(work):
        m = jnp.max(work, axis=-1, keepdims=True)
        idx = jnp.min(jnp.where(work == m, col_f, jnp.float32(NUM_EXPERTS)),
                      axis=-1, keepdims=True)
        return col_f == idx

    work = gate
    selected = pick_one(work)
    work = jnp.where(selected, -jnp.inf, work)
    for _ in range(TOP_K - 1):
        pick = pick_one(work)
        selected = jnp.logical_or(selected, pick)
        work = jnp.where(pick, -jnp.inf, work)

    masked = jnp.where(selected, gate, jnp.float32(-1e20))
    mmax = jnp.max(masked, axis=-1, keepdims=True)
    ex = jnp.exp(masked - mmax)        # non-selected underflow to exactly 0 in f32
    probs = ex * pl.reciprocal(jnp.sum(ex, axis=-1, keepdims=True), approx=True)

    # ---- SwiGLU for shared + all routed experts at once (f32 elementwise) ----
    # gate/pad columns give 0 because the matching W2cat columns are 0.
    y = (up1 * jax.nn.sigmoid(up1)) * up2                             # (TM, FUSED)

    # ---- per-expert gating weights as ONE (TM, FUSED) scale ----
    # selector matmul places probs[:, i] over expert-i's 64 hidden columns ...
    scale = jnp.dot(probs, sel_ref[...], preferred_element_type=jnp.float32)
    # ... and the shared-expert columns get weight 1.
    col = jax.lax.broadcasted_iota(jnp.int32, scale.shape, 1)
    shared_cols = jnp.logical_and(col >= GATE_PAD, col < GATE_PAD + HID_DIMS)
    scale = jnp.where(shared_cols, jnp.float32(1.0), scale)

    # ---- fused down-projection: weighted routed sum + shared in one matmul ----
    out_ref[...] = jnp.dot((y * scale).astype(jnp.bfloat16), w3c_ref[...],
                           preferred_element_type=jnp.float32)


# ---------------- wrapper ----------------
def _pack_weights(gate_w, ew1, ew2, ew3, sw1, sw2, sw3):
    """Concatenate gate + shared + expert weights into 3 fused bf16 operands."""
    D, E = gate_w.shape
    H = sw1.shape[1]
    w1c = jnp.concatenate(
        [gate_w, jnp.zeros((D, GATE_PAD - E), jnp.float32), sw1]
        + [ew1[i] for i in range(E)], axis=1)                          # (D, FUSED)
    w2c = jnp.concatenate(
        [jnp.zeros((D, GATE_PAD), jnp.float32), sw2]
        + [ew2[i] for i in range(E)], axis=1)                          # (D, FUSED)
    w3c = jnp.concatenate(
        [jnp.zeros((GATE_PAD, D), jnp.float32), sw3]
        + [ew3[i] for i in range(E)], axis=0)                          # (FUSED, D)
    # Selector: row i has ones over expert i's hidden slice.
    sel = jnp.concatenate(
        [jnp.zeros((E, GATE_PAD + H), jnp.float32),
         jnp.repeat(jnp.eye(E, dtype=jnp.float32), H, axis=1)], axis=1)  # (E, FUSED)
    return (w1c.astype(jnp.bfloat16), w2c.astype(jnp.bfloat16),
            w3c.astype(jnp.bfloat16), sel)


def moe_layer(x, gate_w, ew1, ew2, ew3, sw1, sw2, sw3):
    """x: (B, T, D) f32. Weights pre-transposed to (in, out) layout."""
    B, T, D = x.shape
    N = B * T
    w1c, w2c, w3c, sel = _pack_weights(gate_w, ew1, ew2, ew3, sw1, sw2, sw3)
    x_flat = x.reshape(N, D).astype(jnp.bfloat16)     # bf16 matmul operand

    # Token tile: whole toy problem in one grid step; at real token counts use
    # TM = 128..512 (multiple of 8).
    TM = N if N <= 512 else 512
    assert N % TM == 0 and TM % 8 == 0

    # NOTE(perf, production scale): the weight operands are grid-invariant; at
    # real D/H single-buffer them (pl.Buffered(1)) or K-tile the fused hidden
    # over an extra "arbitrary" grid axis with a VMEM f32 accumulator so the
    # working set fits v7x's 64 MiB VMEM, and split the token axis (not the
    # weights) across megacore TCs. At these toy sizes the defaults are fine.
    out_flat = pl.pallas_call(
        _moe_kernel,
        out_shape=jax.ShapeDtypeStruct((N, D), jnp.float32),
        grid_spec=pltpu.PrefetchScalarGridSpec(
            num_scalar_prefetch=0,
            grid=(N // TM,),
            in_specs=[
                pl.BlockSpec((TM, D), lambda i: (i, 0)),       # token tile (bf16)
                pl.BlockSpec((D, FUSED), lambda i: (0, 0)),    # fused W1 | gate
                pl.BlockSpec((D, FUSED), lambda i: (0, 0)),    # fused W2
                pl.BlockSpec((FUSED, D), lambda i: (0, 0)),    # fused W3
                pl.BlockSpec((NUM_EXPERTS, FUSED), lambda i: (0, 0)),  # prob selector
            ],
            out_specs=pl.BlockSpec((TM, D), lambda i: (i, 0)),
        ),
        compiler_params=pltpu.CompilerParams(
            dimension_semantics=("parallel",)),
    )(x_flat, w1c, w2c, w3c, sel)
    return out_flat.reshape(B, T, D)


# ---------------- pure-JAX reference (mirrors the PyTorch module) ----------------
def _round_bf16(a):
    # Same rounding of matmul inputs as the kernel's bf16 mixed-precision policy.
    return a.astype(jnp.bfloat16).astype(jnp.float32)


def moe_ref(x, gate_w, ew1, ew2, ew3, sw1, sw2, sw3):
    hi = jax.lax.Precision.HIGHEST
    xb = _round_bf16(x)
    gate = jnp.einsum("btd,de->bte", xb, _round_bf16(gate_w), precision=hi)
    _, idx = jax.lax.top_k(gate, TOP_K)
    sel = jnp.any(idx[..., None] == jnp.arange(NUM_EXPERTS)[None, None, None, :],
                  axis=-2)
    masked = jnp.where(sel, gate, jnp.float32(-1e20))
    probs = jax.nn.softmax(masked, axis=-1)

    def swiglu(w1, w2, w3):
        h1 = jnp.einsum("btd,dh->bth", xb, _round_bf16(w1), precision=hi)
        h2 = jnp.einsum("btd,dh->bth", xb, _round_bf16(w2), precision=hi)
        y = (h1 * jax.nn.sigmoid(h1)) * h2
        return jnp.einsum("bth,hd->btd", y, _round_bf16(w3), precision=hi)

    out = swiglu(sw1, sw2, sw3)                       # shared expert, unweighted
    for i in range(NUM_EXPERTS):
        out = out + probs[..., i:i + 1] * swiglu(ew1[i], ew2[i], ew3[i])
    return out


# ---------------- main ----------------
if __name__ == "__main__":
    key = jax.random.PRNGKey(0)
    ks = jax.random.split(key, 8)

    D, H, E = EMB_DIMS, HID_DIMS, NUM_EXPERTS
    wscale = 0.05

    x = jax.random.normal(ks[0], (BATCH, BLOCK_SIZE, D), dtype=jnp.float32)
    gate_w = wscale * jax.random.normal(ks[1], (D, E), dtype=jnp.float32)
    ew1 = wscale * jax.random.normal(ks[2], (E, D, H), dtype=jnp.float32)
    ew2 = wscale * jax.random.normal(ks[3], (E, D, H), dtype=jnp.float32)
    ew3 = wscale * jax.random.normal(ks[4], (E, H, D), dtype=jnp.float32)
    sw1 = wscale * jax.random.normal(ks[5], (D, H), dtype=jnp.float32)
    sw2 = wscale * jax.random.normal(ks[6], (D, H), dtype=jnp.float32)
    sw3 = wscale * jax.random.normal(ks[7], (H, D), dtype=jnp.float32)

    out = moe_layer(x, gate_w, ew1, ew2, ew3, sw1, sw2, sw3)
    out = jax.block_until_ready(out)

    ref = moe_ref(x, gate_w, ew1, ew2, ew3, sw1, sw2, sw3)
    # bf16 matmul operands + approx softmax reciprocal -> modest tolerance;
    # any routing / fusion bug would show up as O(1e-2)+ errors.
    np.testing.assert_allclose(np.asarray(out), np.asarray(ref),
                               rtol=3e-2, atol=3e-3)
    print("KERNEL_OK")
</pallas_src>

<mosaic_0001>
module attributes {stable_mosaic.version = 11 : i64} {
  func.func @_moe_kernel(%arg0: i32, %arg1: memref<16x32xbf16, #tpu.memory_space<vmem>>, %arg2: memref<32x384xbf16, #tpu.memory_space<vmem>>, %arg3: memref<32x384xbf16, #tpu.memory_space<vmem>>, %arg4: memref<384x32xbf16, #tpu.memory_space<vmem>>, %arg5: memref<4x384xf32, #tpu.memory_space<vmem>>, %arg6: memref<16x32xf32, #tpu.memory_space<vmem>>) attributes {dimension_semantics = [#tpu.dimension_semantics<parallel>], iteration_bounds = array<i64: 1>, scalar_prefetch = 0 : i64, scratch_operands = 0 : i64, tpu.core_type = #tpu.core_type<tc>, window_params = [{transform_indices = @transform_0, window_bounds = array<i64: 16, 32>}, {pipeline_mode = #tpu.pipeline_mode<synchronous>, transform_indices = @transform_1, window_bounds = array<i64: 32, 384>}, {pipeline_mode = #tpu.pipeline_mode<synchronous>, transform_indices = @transform_2, window_bounds = array<i64: 32, 384>}, {pipeline_mode = #tpu.pipeline_mode<synchronous>, transform_indices = @transform_3, window_bounds = array<i64: 384, 32>}, {pipeline_mode = #tpu.pipeline_mode<synchronous>, transform_indices = @transform_4, window_bounds = array<i64: 4, 384>}, {transform_indices = @transform_5, window_bounds = array<i64: 16, 32>}]} {
    %c0 = arith.constant 0 : index
    %c0_0 = arith.constant 0 : index
    %0 = vector.load %arg1[%c0, %c0_0] : memref<16x32xbf16, #tpu.memory_space<vmem>>, vector<16x32xbf16>
    %c0_1 = arith.constant 0 : index
    %c0_2 = arith.constant 0 : index
    %1 = vector.load %arg2[%c0_1, %c0_2] : memref<32x384xbf16, #tpu.memory_space<vmem>>, vector<32x384xbf16>
    %cst = arith.constant dense<0.000000e+00> : vector<16x384xf32>
    %2 = tpu.matmul %0, %1, %cst {dimension_numbers = #tpu.dot_dimension_numbers<[1], [0], [0], [1], [0, 0, 1, 1], [], []>} : vector<16x32xbf16>, vector<32x384xbf16>, vector<16x384xf32> -> vector<16x384xf32>
    %c0_3 = arith.constant 0 : index
    %c0_4 = arith.constant 0 : index
    %3 = vector.load %arg3[%c0_3, %c0_4] : memref<32x384xbf16, #tpu.memory_space<vmem>>, vector<32x384xbf16>
    %cst_5 = arith.constant dense<0.000000e+00> : vector<16x384xf32>
    %4 = tpu.matmul %0, %3, %cst_5 {dimension_numbers = #tpu.dot_dimension_numbers<[1], [0], [0], [1], [0, 0, 1, 1], [], []>} : vector<16x32xbf16>, vector<32x384xbf16>, vector<16x384xf32> -> vector<16x384xf32>
    %5 = vector.extract_strided_slice %2 {offsets = [0, 0], sizes = [16, 4], strides = [1, 1]} : vector<16x384xf32> to vector<16x4xf32>
    %6 = tpu.iota {dimensions = array<i32: 1>} : vector<16x4xi32>
    %7 = arith.sitofp %6 : vector<16x4xi32> to vector<16x4xf32>
    %cst_6 = arith.constant dense<0xFF800000> : vector<16xf32>
    %8 = vector.multi_reduction <maximumf>, %5, %cst_6 [1] : vector<16x4xf32> to vector<16xf32>
    %9 = vector.shape_cast %8 : vector<16xf32> to vector<16x1xf32>
    %10 = vector.broadcast %9 : vector<16x1xf32> to vector<16x4xf32>
    %11 = arith.cmpf oeq, %5, %10 : vector<16x4xf32>
    %cst_7 = arith.constant 4.000000e+00 : f32
    %12 = vector.broadcast %cst_7 : f32 to vector<16x4xf32>
    %13 = arith.select %11, %7, %12 : vector<16x4xi1>, vector<16x4xf32>
    %cst_8 = arith.constant dense<0x7F800000> : vector<16xf32>
    %14 = vector.multi_reduction <minimumf>, %13, %cst_8 [1] : vector<16x4xf32> to vector<16xf32>
    %15 = vector.shape_cast %14 : vector<16xf32> to vector<16x1xf32>
    %16 = vector.broadcast %15 : vector<16x1xf32> to vector<16x4xf32>
    %17 = arith.cmpf oeq, %7, %16 : vector<16x4xf32>
    %cst_9 = arith.constant 0xFF800000 : f32
    %18 = vector.broadcast %cst_9 : f32 to vector<16x4xf32>
    %19 = arith.select %17, %18, %5 : vector<16x4xi1>, vector<16x4xf32>
    %cst_10 = arith.constant dense<0xFF800000> : vector<16xf32>
    %20 = vector.multi_reduction <maximumf>, %19, %cst_10 [1] : vector<16x4xf32> to vector<16xf32>
    %21 = vector.shape_cast %20 : vector<16xf32> to vector<16x1xf32>
    %22 = vector.broadcast %21 : vector<16x1xf32> to vector<16x4xf32>
    %23 = arith.cmpf oeq, %19, %22 : vector<16x4xf32>
    %cst_11 = arith.constant 4.000000e+00 : f32
    %24 = vector.broadcast %cst_11 : f32 to vector<16x4xf32>
    %25 = arith.select %23, %7, %24 : vector<16x4xi1>, vector<16x4xf32>
    %cst_12 = arith.constant dense<0x7F800000> : vector<16xf32>
    %26 = vector.multi_reduction <minimumf>, %25, %cst_12 [1] : vector<16x4xf32> to vector<16xf32>
    %27 = vector.shape_cast %26 : vector<16xf32> to vector<16x1xf32>
    %28 = vector.broadcast %27 : vector<16x1xf32> to vector<16x4xf32>
    %29 = arith.cmpf oeq, %7, %28 : vector<16x4xf32>
    %30 = arith.ori %17, %29 : vector<16x4xi1>
    %cst_13 = arith.constant -1.000000e+20 : f32
    %31 = vector.broadcast %cst_13 : f32 to vector<16x4xf32>
    %32 = arith.select %30, %5, %31 : vector<16x4xi1>, vector<16x4xf32>
    %cst_14 = arith.constant dense<0xFF800000> : vector<16xf32>
    %33 = vector.multi_reduction <maximumf>, %32, %cst_14 [1] : vector<16x4xf32> to vector<16xf32>
    %34 = vector.shape_cast %33 : vector<16xf32> to vector<16x1xf32>
    %35 = vector.broadcast %34 : vector<16x1xf32> to vector<16x4xf32>
    %36 = arith.subf %32, %35 : vector<16x4xf32>
    %37 = math.exp %36 : vector<16x4xf32>
    %cst_15 = arith.constant dense<0.000000e+00> : vector<16xf32>
    %38 = vector.multi_reduction <add>, %37, %cst_15 [1] : vector<16x4xf32> to vector<16xf32>
    %39 = vector.shape_cast %38 : vector<16xf32> to vector<16x1xf32>
    %40 = tpu.reciprocal %39 {approx = true} : vector<16x1xf32> -> vector<16x1xf32>
    %41 = vector.broadcast %40 : vector<16x1xf32> to vector<16x4xf32>
    %42 = arith.mulf %37, %41 : vector<16x4xf32>
    %43 = arith.negf %2 : vector<16x384xf32>
    %44 = math.exp %43 : vector<16x384xf32>
    %cst_16 = arith.constant 1.000000e+00 : f32
    %45 = vector.broadcast %cst_16 : f32 to vector<16x384xf32>
    %46 = arith.addf %45, %44 : vector<16x384xf32>
    %47 = arith.divf %45, %46 : vector<16x384xf32>
    %48 = arith.mulf %2, %47 : vector<16x384xf32>
    %49 = arith.mulf %48, %4 : vector<16x384xf32>
    %c0_17 = arith.constant 0 : index
    %c0_18 = arith.constant 0 : index
    %50 = vector.load %arg5[%c0_17, %c0_18] : memref<4x384xf32, #tpu.memory_space<vmem>>, vector<4x384xf32>
    %cst_19 = arith.constant dense<0.000000e+00> : vector<16x384xf32>
    %51 = tpu.matmul %42, %50, %cst_19 {dimension_numbers = #tpu.dot_dimension_numbers<[1], [0], [0], [1], [0, 0, 1, 1], [], []>} : vector<16x4xf32>, vector<4x384xf32>, vector<16x384xf32> -> vector<16x384xf32>
    %52 = tpu.iota {dimensions = array<i32: 1>} : vector<16x384xi32>
    %c64_i32 = arith.constant 64 : i32
    %53 = vector.broadcast %c64_i32 : i32 to vector<16x384xi32>
    %54 = arith.cmpi sge, %52, %53 : vector<16x384xi32>
    %c128_i32 = arith.constant 128 : i32
    %55 = vector.broadcast %c128_i32 : i32 to vector<16x384xi32>
    %56 = arith.cmpi slt, %52, %55 : vector<16x384xi32>
    %57 = arith.andi %54, %56 : vector<16x384xi1>
    %cst_20 = arith.constant 1.000000e+00 : f32
    %58 = vector.broadcast %cst_20 : f32 to vector<16x384xf32>
    %59 = arith.select %57, %58, %51 : vector<16x384xi1>, vector<16x384xf32>
    %60 = arith.mulf %49, %59 : vector<16x384xf32>
    %61 = arith.truncf %60 : vector<16x384xf32> to vector<16x384xbf16>
    %c0_21 = arith.constant 0 : index
    %c0_22 = arith.constant 0 : index
    %62 = vector.load %arg4[%c0_21, %c0_22] : memref<384x32xbf16, #tpu.memory_space<vmem>>, vector<384x32xbf16>
    %cst_23 = arith.constant dense<0.000000e+00> : vector<16x32xf32>
    %63 = tpu.matmul %61, %62, %cst_23 {dimension_numbers = #tpu.dot_dimension_numbers<[1], [0], [0], [1], [0, 0, 1, 1], [], []>} : vector<16x384xbf16>, vector<384x32xbf16>, vector<16x32xf32> -> vector<16x32xf32>
    %c0_24 = arith.constant 0 : index
    %c0_25 = arith.constant 0 : index
    %64 = vector.load %arg6[%c0_24, %c0_25] : memref<16x32xf32, #tpu.memory_space<vmem>>, vector<16x32xf32>
    tpu.vector_store %arg6[%c0_24, %c0_25], %63 {strides = array<i32>} : memref<16x32xf32, #tpu.memory_space<vmem>>, vector<16x32xf32>,
    return
  }
  func.func @transform_0(%arg0: i32) -> (i32, i32) {
    %c0_i32 = arith.constant 0 : i32
    %c0_i32_0 = arith.constant 0 : i32
    return %arg0, %c0_i32 : i32, i32
  }
  func.func @transform_1(%arg0: i32) -> (i32, i32) {
    %c0_i32 = arith.constant 0 : i32
    %c0_i32_0 = arith.constant 0 : i32
    %c0_i32_1 = arith.constant 0 : i32
    return %c0_i32, %c0_i32_0 : i32, i32
  }
  func.func @transform_2(%arg0: i32) -> (i32, i32) {
    %c0_i32 = arith.constant 0 : i32
    %c0_i32_0 = arith.constant 0 : i32
    %c0_i32_1 = arith.constant 0 : i32
    return %c0_i32, %c0_i32_0 : i32, i32
  }
  func.func @transform_3(%arg0: i32) -> (i32, i32) {
    %c0_i32 = arith.constant 0 : i32
    %c0_i32_0 = arith.constant 0 : i32
    %c0_i32_1 = arith.constant 0 : i32
    return %c0_i32, %c0_i32_0 : i32, i32
  }
  func.func @transform_4(%arg0: i32) -> (i32, i32) {
    %c0_i32 = arith.constant 0 : i32
    %c0_i32_0 = arith.constant 0 : i32
    %c0_i32_1 = arith.constant 0 : i32
    return %c0_i32, %c0_i32_0 : i32, i32
  }
  func.func @transform_5(%arg0: i32) -> (i32, i32) {
    %c0_i32 = arith.constant 0 : i32
    %c0_i32_0 = arith.constant 0 : i32
    return %arg0, %c0_i32 : i32, i32
  }
}

</mosaic_0001>

<bundles_post_ra>
// kernel: tpu_custom_call.1
= control target key start
LH: loop header
LB: loop body
LE: loop exit
PB: predicated region body
PF: predicated region fallthrough
CT: control target
= control target key end

     0   :  { %v1124_v2 = vmov 0   ;;  %vm69_vm0 = vcmask 261120   ;;  %s1379_s0 = inlined_call_operand.vmem [shape: bf16[16,32], index: 0, kind: input, shape index: {}]   ;;  %s1380_s1 = inlined_call_operand.vmem [shape: bf16[32,384], index: 1, kind: input, shape index: {}]   ;;  %s1381_s2 = inlined_call_operand.vmem [shape: bf16[32,384], index: 2, kind: input, shape index: {}]   ;;  %s1382_s3 = inlined_call_operand.vmem [shape: bf16[384,32], index: 3, kind: input, shape index: {}]   ;;  %s1383_s4 = inlined_call_operand.vmem [shape: f32[4,384], index: 4, kind: input, shape index: {}]   ;;  %s1384_s5 = inlined_call_operand.hbm [shape: f32[16,32], index: 5, kind: output, shape index: {}]  }
   0x1   :  { %v1026_v0 = vld [vmem:[%s1380_s1 + $0x4] ss:$12 sps:$4 sm:$0xff]   ;;  %v1028_v1 = vld [vmem:[%s1380_s1] ss:$12 sps:$4 sm:$0xff]   ;;  %105 = vmatprep.mubr.bf16.mxu0 %v1124_v2  ;;  %v1029_v3 = vld [vmem:[%s1380_s1 + $0x1c] ss:$12 sps:$4 sm:$0xff]  }
   0x2   :  { %73 = vmatprep.subr.bf16.mxu0 %v1026_v0  ;;  %v1031_v4 = vld [vmem:[%s1380_s1 + $0x18] ss:$12 sps:$4 sm:$0xff]   ;;  %v1033_v7 = vld [vmem:[%s1381_s2] ss:$12 sps:$4 sm:$0xff]   ;;  %v1038_v8 = vld [vmem:[%s1381_s2 + $0x1c] ss:$12 sps:$4 sm:$0xff]  }
   0x3   :  { %74 = vmatpush1.bf16.msra.mxu0 %v1028_v1  ;;  %v1175_v5 = vld [vmem:[%s1379_s0] sm:$0xff]  }
   0x4   :  { %75 = vmatprep.subr.bf16.mxu0 %v1029_v3  ;;  %v1035_v6 = vld [vmem:[%s1381_s2 + $0x4] ss:$12 sps:$4 sm:$0xff]  }
   0x5   :  { %v1036_v9 = vld [vmem:[%s1381_s2 + $0x18] ss:$12 sps:$4 sm:$0xff]  }
   0x7   :  { %76 = vmatpush1.bf16.msra.mxu0 %v1031_v4 }
   0x8   :  { %197 = vmatprep.subr.bf16.mxu0 %v1035_v6 }
   0xa   :  { %892 = vmatmul.mubr.msk.bf16.vlgmr.msra.gmra.mrb[0].mxu0 %vm69_vm0, %v1175_v5 }
   0xb   :  { %198 = vmatpush1.bf16.msra.mxu0 %v1033_v7  ;;  %229 = vmatprep.mubr.bf16.mxu0 %v1124_v2 }
   0xc   :  { %199 = vmatprep.subr.bf16.mxu0 %v1038_v8 }
   0xf   :  { %200 = vmatpush1.bf16.msra.mxu0 %v1036_v9 }
  0x12   :  { %900 = vmatmul.mubr.msk.bf16.vlgmr.msra.gmra.mrb[4].mxu0 %vm69_vm0, %v1175_v5 }
  0x13   :  { %10 = vsyncpa [#allocation3], 0  ;;  %vm284_vm1 = vcmask 31744   ;;  %v281_v44 = vlaneseq  ;;  %v1039_v8 = vld [vmem:[%s1380_s1 + $0x8] ss:$12 sps:$4 sm:$0xff]   ;;  %v1125_v9 = vmov 0.0  }
  0x14   :  { %979 = vmatprep.subr.bf16.mxu1 %v1125_v9  ;;  %vm1126_vm12 = vmmov 0   ;;  %479 = vmatprep.mubr.f32.mxu0 %v1125_v9  ;;  %vm408_vm13 = vcmask 1043456  }
  0x15   :  { %v1213_v45 = vand.u32 127, %v281_v44  ;;  %983 = vmatprep.mubr.msk.bf16.mxu1 %vm1126_vm12, %v1125_v9  ;;  %980 = vmatpush3.bf16.msra.mxu1 %v1039_v8  ;;  %v1057_v8 = vld [vmem:[%s1382_s3 + $0xa0] sm:$0xff]  }
  0x16   :  { %981 = vmatprep.subr.bf16.mxu1 %v1125_v9 }
  0x17   :  { %v283_v46 = vcvt.s32.f32 %v1213_v45  ;;  %vm569_vm14 = vcmp.ge.s32.totalorder %v1213_v45, 64 }
  0xdd   :  { %v1193_v10 = vpop.f32.mrb[0].mxu0 }
  0xde   :  { %v902_v11 = vmul.f32 -1.442695, %v1193_v10  ;;  %v109_v12 = vpop.f32.mrb[1].mxu0  ;;  %v285_v13 = vsel %vm284_vm1, %v1193_v10, -inf }
  0xdf   :  { %v903_v14 = vmul.f32 -1.442695, %v109_v12  ;;  %286 = vmax.xlane.f32.xlu0 %v285_v13  ;;  %v1198_v15 = vpop.f32.mrb[2].mxu0 }
  0xe0   :  { %1068 = vpow2.f32 %v902_v11  ;;  %v905_v16 = vmul.f32 -1.442695, %v1198_v15  ;;  %v113_v17 = vpop.f32.mrb[3].mxu0  ;;  %v288_v19 = vsel %vm284_vm1, %v1198_v15, -inf  ;;  %v1041_v11 = vld [vmem:[%s1381_s2 + $0x8] ss:$12 sps:$4 sm:$0xff]  }
  0xe1   :  { %1070 = vpow2.f32 %v903_v14  ;;  %v906_v18 = vmul.f32 -1.442695, %v113_v17 }
  0xe2   :  { %1072 = vpow2.f32 %v905_v16 }
  0xe3   :  { %1074 = vpow2.f32 %v906_v18  ;;  %289 = vmax.xlane.f32.xlu0 %v288_v19 }
  0xe5   :  { %v231_v20 = vpop.f32.mrb[4].mxu0 }
  0xe6   :  { %v233_v21 = vpop.f32.mrb[5].mxu0 }
  0xe7   :  { %v235_v22 = vpop.f32.mrb[6].mxu0 }
  0xe8   :  { %v237_v23 = vpop.f32.mrb[7].mxu0 }
  0xea   :  { %v1069_v24 = vpop.eup %1068 }
  0xeb   :  { %v1071_v25 = vpop.eup %1070  ;;  %v367_v26 = vadd.f32 1.0, %v1069_v24  ;;  %v398_v24 = vld [vmem:[%s1383_s4 + $0x8] sm:$0xf] }
  0xec   :  { %v1073_v27 = vpop.eup %1072  ;;  %v368_v28 = vadd.f32 1.0, %v1071_v25  ;;  %v1044_v25 = vld [vmem:[%s1382_s3 + $0x40] sm:$0xff]  }
  0xed   :  { %v1075_v29 = vpop.eup %1074  ;;  %1076 = vrcp.f32 %v367_v26  ;;  %v370_v30 = vadd.f32 1.0, %v1073_v27 }
  0xee   :  { %1078 = vrcp.f32 %v368_v28  ;;  %v371_v31 = vadd.f32 1.0, %v1075_v29 }
  0xef   :  { %1080 = vrcp.f32 %v370_v30 }
  0xf0   :  { %1082 = vrcp.f32 %v371_v31 }
  0xf7   :  { %v1077_v32 = vpop.eup %1076 }
  0xf8   :  { %v1079_v33 = vpop.eup %1078  ;;  %v385_v34 = vmul.f32 %v1077_v32, %v1193_v10 }
  0xf9   :  { %v1081_v35 = vpop.eup %1080  ;;  %v386_v36 = vmul.f32 %v1079_v33, %v109_v12  ;;  %v1042_v12 = vld [vmem:[%s1381_s2 + $0x20] ss:$12 sps:$4 sm:$0xff]  }
  0xfa   :  { %v1083_v37 = vpop.eup %1082  ;;  %v1204_v38 = vmul.f32 %v385_v34, %v231_v20  ;;  %v388_v39 = vmul.f32 %v1081_v35, %v1198_v15 }
  0xfb   :  { %v389_v40 = vmul.f32 %v1083_v37, %v113_v17  ;;  %v1207_v41 = vmul.f32 %v386_v36, %v233_v21 }
  0xfc   :  { %v1209_v42 = vmul.f32 %v388_v39, %v235_v22 }
  0xfd   :  { %v1211_v43 = vmul.f32 %v389_v40, %v237_v23 }
 0x16c   :  { %v287_v47 = vpop.xlane.xlu0 %286 }
 0x16d   :  { %vm291_vm2 = vcmp.eq.f32.partialorder %v1193_v10, %v287_v47 }
 0x16e   :  { %v293_v48 = vsel %vm291_vm2, %v283_v46, 4.0 }
 0x16f   :  { %v295_v49 = vsel %vm284_vm1, %v293_v48, inf }
 0x170   :  { %296 = vmin.xlane.f32.xlu1 %v295_v49  ;;  %v290_v50 = vpop.xlane.xlu0 %289 }
 0x171   :  { %vm292_vm3 = vcmp.eq.f32.partialorder %v1198_v15, %v290_v50 }
 0x172   :  { %v294_v51 = vsel %vm292_vm3, %v283_v46, 4.0 }
 0x173   :  { %v298_v52 = vsel %vm284_vm1, %v294_v51, inf }
 0x174   :  { %299 = vmin.xlane.f32.xlu1 %v298_v52 }
 0x1fd   :  { %v297_v53 = vpop.xlane.xlu1 %296 }
 0x1fe   :  { %vm301_vm4 = vcmp.eq.f32.partialorder %v283_v46, %v297_v53 }
 0x1ff   :  { %v303_v54 = vsel %vm301_vm4, -inf, %v1193_v10 }
 0x200   :  { %v305_v55 = vsel %vm284_vm1, %v303_v54, -inf }
 0x201   :  { %306 = vmax.xlane.f32.xlu0 %v305_v55  ;;  %v300_v56 = vpop.xlane.xlu1 %299 }
 0x202   :  { %vm302_vm5 = vcmp.eq.f32.partialorder %v283_v46, %v300_v56  ;;  %v1047_v56 = vld [vmem:[%s1382_s3 + $0x48] sm:$0xff]  }
 0x203   :  { %v304_v57 = vsel %vm302_vm5, -inf, %v1198_v15 }
 0x204   :  { %v308_v58 = vsel %vm284_vm1, %v304_v57, -inf }
 0x205   :  { %309 = vmax.xlane.f32.xlu1 %v308_v58  ;;  %v1045_v58 = vld [vmem:[%s1382_s3 + $0x80] sm:$0xff]  }
 0x28e   :  { %v307_v59 = vpop.xlane.xlu0 %306 }
 0x28f   :  { %vm311_vm6 = vcmp.eq.f32.partialorder %v303_v54, %v307_v59  ;;  %v1046_v54 = vld [vmem:[%s1382_s3] sm:$0xff]   ;;  %v1049_v59 = vld [vmem:[%s1382_s3 + $0x8] sm:$0xff]  }
 0x290   :  { %v313_v60 = vsel %vm311_vm6, %v283_v46, 4.0 }
 0x291   :  { %v315_v61 = vsel %vm284_vm1, %v313_v60, inf }
 0x292   :  { %v310_v62 = vpop.xlane.xlu1 %309  ;;  %316 = vmin.xlane.f32.xlu0 %v315_v61  ;;  %v1050_v61 = vld [vmem:[%s1382_s3 + $0x50] sm:$0xff]  }
 0x293   :  { %vm312_vm7 = vcmp.eq.f32.partialorder %v304_v57, %v310_v62  ;;  %v1048_v62 = vld [vmem:[%s1382_s3 + $0x88] sm:$0xff]  }
 0x294   :  { %v314_v63 = vsel %vm312_vm7, %v283_v46, 4.0 }
 0x295   :  { %v318_v0 = vsel %vm284_vm1, %v314_v63, inf  ;;  %v1052_v63 = vld [vmem:[%s1382_s3 + $0x10] sm:$0xff]  }
 0x296   :  { %319 = vmin.xlane.f32.xlu1 %v318_v0  ;;  %v1053_v0 = vld [vmem:[%s1382_s3 + $0x58] sm:$0xff]  }
 0x31f   :  { %v317_v1 = vpop.xlane.xlu0 %316 }
 0x320   :  { %vm321_vm8 = vcmp.eq.f32.partialorder %v283_v46, %v317_v1  ;;  %v1051_v1 = vld [vmem:[%s1382_s3 + $0x90] sm:$0xff]  }
 0x321   :  { %vm323_vm9 = vmor %vm301_vm4, %vm321_vm8 }
 0x322   :  { %v325_v2 = vsel %vm323_vm9, %v1193_v10, -1e+20  ;;  %v1040_v10 = vld [vmem:[%s1380_s1 + $0x20] ss:$12 sps:$4 sm:$0xff]  }
 0x323   :  { %v320_v3 = vpop.xlane.xlu1 %319  ;;  %v327_v4 = vsel %vm284_vm1, %v325_v2, -inf  ;;  %982 = vmatpush3.bf16.msra.mxu1 %v1040_v10  ;;  %v1060_v10 = vld [vmem:[%s1382_s3 + $0xa8] sm:$0xff]  }
 0x324   :  { %vm322_vm10 = vcmp.eq.f32.partialorder %v283_v46, %v320_v3  ;;  %328 = vmax.xlane.f32.xlu0 %v327_v4  ;;  %987 = vmatprep.subr.bf16.mxu1 %v1125_v9  ;;  %v1056_v3 = vld [vmem:[%s1382_s3 + $0x60] sm:$0xff]   ;;  %v1054_v4 = vld [vmem:[%s1382_s3 + $0x98] sm:$0xff]  }
 0x325   :  { %vm324_vm11 = vmor %vm302_vm5, %vm322_vm10 }
 0x326   :  { %v326_v6 = vsel %vm324_vm11, %v1198_v15, -1e+20  ;;  %984 = vmatmul.mubr.msk.bf16.vlgmr.msra.gmra.mrb[0].mxu1 %vm69_vm0, %v1175_v5 }
 0x327   :  { %v330_v7 = vsel %vm284_vm1, %v326_v6, -inf  ;;  %988 = vmatpush3.bf16.msra.mxu1 %v1041_v11  ;;  %991 = vmatprep.mubr.msk.bf16.mxu1 %vm1126_vm12, %v1125_v9  ;;  %v1061_v11 = vld [vmem:[%s1382_s3 + $0x28] sm:$0xff]  }
 0x328   :  { %331 = vmax.xlane.f32.xlu1 %v330_v7  ;;  %989 = vmatprep.subr.bf16.mxu1 %v1125_v9  ;;  %v1059_v7 = vld [vmem:[%s1382_s3 + $0x68] sm:$0xff]  }
 0x32b   :  { %990 = vmatpush3.bf16.msra.mxu1 %v1042_v12  ;;  %v1062_v12 = vld [vmem:[%s1382_s3 + $0x70] sm:$0xff]  }
 0x32c   :  { %995 = vmatprep.subr.msk.mxu1 %vm408_vm13, %v398_v24 }
 0x32e   :  { %992 = vmatmul.mubr.msk.bf16.vlgmr.msra.gmra.mrb[4].mxu1 %vm69_vm0, %v1175_v5  ;;  %v397_v5 = vld [vmem:[%s1383_s4] sm:$0xff] }
 0x32f   :  { %v401_v23 = vcombine.high %v397_v5, %v397_v5  ;;  %996 = vmatpush3.msk.msra.mxu1 %vm408_vm13, %v398_v24 }
 0x330   :  { %1000 = vmatprep.subr.bf16.mxu1 %v1125_v9 }
 0x331   :  { %908 = vmatprep.subr.msk.mxu0 %vm408_vm13, %v401_v23 }
 0x332   :  { %909 = vmatpush1.msk.msra.mxu0 %vm408_vm13, %v397_v5 }
 0x333   :  { %948 = vmatprep.subr.bf16.mxu0 %v1044_v25 }
 0x3b1   :  { %v329_v13 = vpop.xlane.xlu0 %328 }
 0x3b2   :  { %v333_v14 = vsub.f32 %v325_v2, %v329_v13  ;;  %v1055_v2 = vld [vmem:[%s1382_s3 + $0x18] sm:$0xff]   ;;  %v1063_v13 = vld [vmem:[%s1382_s3 + $0xb0] sm:$0xff]  }
 0x3b4   :  { %v335_v15 = vmul.f32 1.442695, %v333_v14  ;;  %v1064_v14 = vld [vmem:[%s1382_s3 + $0x30] sm:$0xff]  }
 0x3b5   :  { %v332_v16 = vpop.xlane.xlu1 %331 }
 0x3b6   :  { %1084 = vpow2.f32 %v335_v15  ;;  %v334_v17 = vsub.f32 %v326_v6, %v332_v16  ;;  %v1058_v6 = vld [vmem:[%s1382_s3 + $0x20] sm:$0xff]   ;;  %v1065_v15 = vld [vmem:[%s1382_s3 + $0x78] sm:$0xff]  }
 0x3b7   :  { %v1066_v16 = vld [vmem:[%s1382_s3 + $0xb8] sm:$0xff]  }
 0x3b8   :  { %v337_v18 = vmul.f32 1.442695, %v334_v17  ;;  %v1067_v17 = vld [vmem:[%s1382_s3 + $0x38] sm:$0xff]   ;;  %s1127_s3 = smov [#allocation2]  }
 0x3b9   :  { %s874_s12 = sshll.u32 %s1127_s3, 4  ;;  %s875_s12 = int_to_ptr.vmem [resolvable:$true] %s874_s12 }
 0x3ba   :  { %1086 = vpow2.f32 %v337_v18  ;;  %s1100_s13 = scalar_lea.vmem %s875_s12, 256  ;;  %p1105_p1 = scmp.lt.s32.totalorder %s875_s12, %s875_s12 }
 0x3bb   :  { %p1101_p0 = scmp.ne.s32.totalorder %s875_s12, %s1100_s13  ;;  %p1106_p2 = scmp.lt.s32.totalorder %s1100_s13, %s1100_s13 }
 0x3bd   :  { %p1107_p3 = por %p1106_p2, %p1105_p1 }
 0x3bf   :  { %p1108_p4 = pnand %p1107_p3, %p1101_p0 }
 0x3c0   :  { %v1085_v19 = vpop.eup %1084 }
 0x3c1   :  { %v339_v20 = vsel %vm284_vm1, %v1085_v19, 0.0 }
 0x3c2   :  { %340 = vadd.xlane.f32.xlu0 %v339_v20 }
 0x3c4   :  { %v1087_v21 = vpop.eup %1086 }
 0x3c5   :  { %v342_v22 = vsel %vm284_vm1, %v1087_v21, 0.0 }
 0x3c6   :  { %343 = vadd.xlane.f32.xlu1 %v342_v22 }
 0x3f9   :  { %v150_v26 = vpop.f32.mrb[0].mxu1 }
 0x3fa   :  { %v904_v27 = vmul.f32 -1.442695, %v150_v26  ;;  %v985_v28 = vpop.f32.mrb[1].mxu1 }
 0x3fb   :  { %v153_v29 = vpop.f32.mrb[2].mxu1 }
 0x3fc   :  { %1088 = vpow2.f32 %v904_v27  ;;  %v907_v30 = vmul.f32 -1.442695, %v153_v29  ;;  %v986_v31 = vpop.f32.mrb[3].mxu1 }
 0x3fe   :  { %1090 = vpow2.f32 %v907_v30 }
 0x401   :  { %v274_v32 = vpop.f32.mrb[4].mxu1 }
 0x402   :  { %v993_v33 = vpop.f32.mrb[5].mxu1 }
 0x403   :  { %v277_v34 = vpop.f32.mrb[6].mxu1 }
 0x404   :  { %v994_v35 = vpop.f32.mrb[7].mxu1 }
 0x406   :  { %v1089_v36 = vpop.eup %1088 }
 0x407   :  { %v369_v37 = vadd.f32 1.0, %v1089_v36 }
 0x408   :  { %v1091_v39 = vpop.eup %1090 }
 0x409   :  { %1092 = vrcp.f32 %v369_v37  ;;  %v372_v40 = vadd.f32 1.0, %v1091_v39 }
 0x40b   :  { %1094 = vrcp.f32 %v372_v40 }
 0x413   :  { %v1093_v44 = vpop.eup %1092 }
 0x414   :  { %v387_v46 = vmul.f32 %v1093_v44, %v150_v26 }
 0x415   :  { %v1095_v47 = vpop.eup %1094 }
 0x416   :  { %v390_v48 = vmul.f32 %v1095_v47, %v153_v29  ;;  %v1271_v49 = vmul.f32 %v387_v46, %v274_v32 }
 0x418   :  { %v1273_v50 = vmul.f32 %v390_v48, %v277_v34 }
 0x44f   :  { %v341_v51 = vpop.xlane.xlu0 %340 }
 0x450   :  { %1096 = vrcp.f32 %v341_v51 }
 0x453   :  { %v344_v52 = vpop.xlane.xlu1 %343 }
 0x454   :  { %1098 = vrcp.f32 %v344_v52 }
 0x45a   :  { %v1097_v53 = vpop.eup %1096 }
 0x45b   :  { %v347_v55 = vmul.f32 %v1097_v53, %v1085_v19 }
 0x45d   :  { %910 = vmatmul.mubr.msk.f32.vlgmr.msra.gmra.mrb[8].mxu0 %vm284_vm1, %v347_v55  ;;  %997 = vmatprep.mubr.msk.f32.mxu1 %vm284_vm1, %v347_v55 }
 0x45e   :  { %v1099_v57 = vpop.eup %1098  ;;  %485 = vmatprep.mubr.f32.mxu0 %v1125_v9  ;;  %949 = vmatpush3.bf16.msra.mxu0 %v1046_v54 }
 0x45f   :  { %v348_v60 = vmul.f32 %v1099_v57, %v1087_v21  ;;  %950 = vmatprep.subr.bf16.mxu0 %v1047_v56 }
 0x461   :  { %911 = vmatmul.mubr.msk.f32.gmra.mrb[10].mxu0 %vm284_vm1, %v348_v60  ;;  %998 = vmatmul.mubr.msk.f32.vlgmr.msra.gmra.mrb[8].mxu1 %vm284_vm1, %v348_v60 }
 0x462   :  { %1001 = vmatpush3.bf16.msra.mxu1 %v1045_v58  ;;  %951 = vmatpush3.bf16.msra.mxu0 %v1049_v59 }
 0x463   :  { %1002 = vmatprep.subr.bf16.mxu1 %v1125_v9  ;;  %952 = vmatprep.subr.bf16.mxu0 %v1050_v61 }
 0x464   :  { %1016 = vmatprep.mubr.msk.bf16.mxu1 %vm1126_vm12, %v1125_v9 }
 0x466   :  { %1003 = vmatpush3.bf16.msra.mxu1 %v1048_v62  ;;  %953 = vmatpush3.bf16.msra.mxu0 %v1052_v63 }
 0x467   :  { %1004 = vmatprep.subr.bf16.mxu1 %v1125_v9  ;;  %954 = vmatprep.subr.bf16.mxu0 %v1053_v0 }
 0x46a   :  { %1005 = vmatpush3.bf16.msra.mxu1 %v1051_v1  ;;  %955 = vmatpush3.bf16.msra.mxu0 %v1055_v2 }
 0x46b   :  { %1006 = vmatprep.subr.bf16.mxu1 %v1125_v9  ;;  %956 = vmatprep.subr.bf16.mxu0 %v1056_v3 }
 0x46e   :  { %1007 = vmatpush3.bf16.msra.mxu1 %v1054_v4  ;;  %957 = vmatpush3.bf16.msra.mxu0 %v1058_v6 }
 0x46f   :  { %1008 = vmatprep.subr.bf16.mxu1 %v1125_v9  ;;  %958 = vmatprep.subr.bf16.mxu0 %v1059_v7 }
 0x472   :  { %1009 = vmatpush3.bf16.msra.mxu1 %v1057_v8  ;;  %959 = vmatpush3.bf16.msra.mxu0 %v1061_v11 }
 0x473   :  { %1010 = vmatprep.subr.bf16.mxu1 %v1125_v9  ;;  %960 = vmatprep.subr.bf16.mxu0 %v1062_v12 }
 0x476   :  { %1011 = vmatpush3.bf16.msra.mxu1 %v1060_v10  ;;  %961 = vmatpush3.bf16.msra.mxu0 %v1064_v14 }
 0x477   :  { %1012 = vmatprep.subr.bf16.mxu1 %v1125_v9  ;;  %962 = vmatprep.subr.bf16.mxu0 %v1065_v15 }
 0x47a   :  { %1013 = vmatpush3.bf16.msra.mxu1 %v1063_v13  ;;  %963 = vmatpush3.bf16.msra.mxu0 %v1067_v17 }
 0x47b   :  { %1014 = vmatprep.subr.bf16.mxu1 %v1125_v9 }
 0x47e   :  { %1015 = vmatpush3.bf16.msra.mxu1 %v1066_v16 }
 0x530   :  { %v481_v18 = vpop.f32.mrb[8].mxu0 }
 0x531   :  { %v578_v19 = vsel %vm569_vm14, 1.0, %v481_v18  ;;  %v483_v9 = vpop.f32.mrb[9].mxu0 }
 0x532   :  { %v584_v20 = vmul.f32 %v578_v19, %v1204_v38  ;;  %v585_v21 = vmul.f32 %v483_v9, %v1207_v41 }
 0x534   :  { %v487_v22 = vpop.f32.mrb[10].mxu0  ;;  %v999_v5 = vpop.f32.mrb[8].mxu1 }
 0x535   :  { %v581_v23 = vsel %vm569_vm14, 1.0, %v487_v22  ;;  %v589_v24 = vmul.f32 %v999_v5, %v1273_v50  ;;  %v489_v25 = vpop.f32.mrb[11].mxu0  ;;  %v558_v26 = vpop.f32.mrb[9].mxu1 }
 0x536   :  { %v587_v27 = vmul.f32 %v581_v23, %v1209_v42  ;;  %v588_v28 = vmul.f32 %v489_v25, %v1211_v43  ;;  %v586_v45 = vmul.f32 %v558_v26, %v1271_v49 }
 0x538   :  { %v590_v29 = vpack.c.bf16 %v587_v27, %v584_v20  ;;  %v591_v30 = vpack.c.bf16 %v588_v28, %v585_v21  ;;  %v592_v31 = vpack.c.bf16 %v589_v24, %v586_v45 }
 0x53a   :  { %817 = vmatprep.mubr.bf16.mxu0 %v591_v30  ;;  %1017 = vmatmul.mubr.bf16.vlgmr.msra.gmra.mrb[12].mxu1 %v592_v31 }
 0x53b   :  { %818 = vmatmul.mubr.bf16.vlgmr.msra.gmra.mrb[12].mxu0 %v590_v29 }
 0x60d   :  { %v860_v38 = vpop.f32.mrb[12].mxu1 }
 0x60e   :  { %v964_v41 = vpop.f32.mrb[12].mxu0  ;;  %v1018_v32 = vpop.f32.mrb[13].mxu1 }
 0x60f   :  { %v965_v33 = vpop.f32.mrb[13].mxu0  ;;  %v863_v34 = vpop.f32.mrb[14].mxu1 }
 0x610   :  { %v966_v35 = vadd.f32 %v965_v33, %v964_v41  ;;  %v967_v36 = vpop.f32.mrb[14].mxu0  ;;  %v1019_v37 = vpop.f32.mrb[15].mxu1 }
 0x611   :  { %v968_v42 = vpop.f32.mrb[15].mxu0 }
 0x612   :  { %v861_v43 = vadd.f32 %v966_v35, %v860_v38  ;;  %v969_v39 = vadd.f32 %v968_v42, %v967_v36 }
 0x614   :  { %867 = vst.msk [vmem:[#allocation2] sm:$0xff] %vm69_vm0, %v861_v43  ;;  %v864_v40 = vadd.f32 %v969_v39, %v863_v34 }
 0x616   :  { %868 = vst.msk [vmem:[#allocation2 + $0x8] sm:$0xff] %vm69_vm0, %v864_v40 }
 0x617   :  { %1111 = shalt.err (!%p1108_p4)
}
 0x618   :  { %s1112_s16 = scalar_lea.hbm %s1384_s5, 256 }
 0x619   :  { %p1113_p5 = scmp.ne.s32.totalorder %s1384_s5, %s1112_s16  ;;  %p1116_p6 = scmp.lt.u32.totalorder %s1112_s16, %s1384_s5 }
 0x61b   :  { %p1118_p7 = pnand %p1116_p6, %p1113_p5 }
 0x61d   :  { %1121 = shalt.err (!%p1118_p7)
}
 0x61e   :  { %s1128_s19 = smov 128   ;;  %s1129_s20 = smov 8  }
 0x61f   :  { %880 = dma.vmem_to_hbm [thread:$0]  %s875_s12, 256, %s1384_s5, [#allocation3], %s1128_s19, %s1128_s19, %s1129_s20  }
 0x620   :  { %1122 = dma.done.wait [#allocation3], 256  }
 0x621   :  { %1123 = vsyncadd [#allocation3], 4294967040 }
 0x622   :  { %884 = vsyncpa [#allocation3], 1 }

</bundles_post_ra>
